<compile_context>
chip_gen: v6e
topology: v6e:2x2x1
jax: 0.10.0
libtpu: 0.0.40
codegen_flags: <defaults>
</compile_context>

<pallas_src>
import functools

import jax
import jax.numpy as jnp
from jax.experimental import pallas as pl
from jax.experimental.pallas import tpu as pltpu


def _affine_t(wt, h, bias):
    """Channels-in-sublanes affine: (N, K) @ (K, T) + (N, 1) -> (N, T)."""
    _, k = wt.shape
    if k <= 32:
        # Tiny contraction: unrolled VPU multiply-adds beat a padded MXU matmul.
        acc = wt[:, 0:1] * h[0:1, :]
        for kk in range(1, k):
            acc = acc + wt[:, kk:kk + 1] * h[kk:kk + 1, :]
        return acc + bias
    return jnp.dot(wt, h, preferred_element_type=jnp.float32) + bias


def coordgate_kernel(x_ref, gp_ref, cp_ref, o_ref, gate_ref, *, H, W, C, Cout, tile):
    # x_ref:    (1, C, tile)       input tile (one batch element, channels in sublanes)
    # gp_ref:   (C, C + 4)         packed encoder params [w0^T | b0 | w1^T | b1]
    # cp_ref:   (Cout, C + 1)      packed 1x1-conv params [conv_w^T | conv_b]
    # o_ref:    (1, Cout, tile)
    # gate_ref: (C, tile)          VMEM scratch, cached across the batch axis
    s = pl.program_id(0)   # spatial tile index ("parallel")
    b = pl.program_id(1)   # batch index (innermost, "arbitrary")

    @pl.when(b == 0)
    def _compute_gate():
        # Analytic position encoding for this spatial tile:
        #   flat p -> (i, j) = (p // W, p % W); px = linspace(-1,1,H)[i], py = ...[j]
        lane = jax.lax.broadcasted_iota(jnp.int32, (1, tile), 1).astype(jnp.float32)
        flat = lane + (s * tile).astype(jnp.float32)          # exact in f32 for HW < 2^24
        # Float divmod with one exact correction step (avoids vector integer div).
        q = jnp.floor(flat * (1.0 / W))
        r = flat - q * W
        q = jnp.where(r < 0, q - 1.0, q)
        r = jnp.where(r < 0, r + W, r)
        q = jnp.where(r >= W, q + 1.0, q)
        r = jnp.where(r >= W, r - W, r)
        sh = 0.0 if H <= 1 else 2.0 / (H - 1)
        sw = 0.0 if W <= 1 else 2.0 / (W - 1)
        px = sh * q - 1.0                                     # (1, tile)
        py = sw * r - 1.0                                     # (1, tile)

        gp = gp_ref[...]
        w0t = gp[:, 0:2]              # (C, 2)
        b0 = gp[:, 2:3]               # (C, 1)
        w1t = gp[:, 3:3 + C]          # (C, C)
        b1 = gp[:, 3 + C:4 + C]       # (C, 1)

        h = w0t[:, 0:1] * px + w0t[:, 1:2] * py + b0          # (C, tile)
        h = _affine_t(w1t, h, b1)                             # (C, tile)
        gate_ref[...] = jnp.maximum(h, 0.0)                   # ReLU on the gate only

    cp = cp_ref[...]
    wct = cp[:, 0:C]                  # (Cout, C)
    bc = cp[:, C:C + 1]               # (Cout, 1)

    xg = x_ref[0] * gate_ref[...]                             # (C, tile)
    y = _affine_t(wct, xg, bc)                                # (Cout, tile)
    o_ref[0] = y.astype(o_ref.dtype)


def coordgate_pos_forward(x_nchw, w0, b0, w1, b1, conv_w, conv_b, *, max_tile=1024):
    """CoordGate('pos') forward.

    x_nchw: (B, Cenc, H, W) f32
    w0: (2, Cenc), b0: (Cenc,)           first encoder Linear (stored as (in, out))
    w1: (Cenc, Cenc), b1: (Cenc,)        second encoder Linear
    conv_w: (Cenc, Cout), conv_b: (Cout,)   1x1 conv
    returns (B, Cout, H, W) f32
    """
    B, C, H, W = x_nchw.shape
    HW = H * W
    Cout = conv_w.shape[1]

    # --- spatial tile: lane-dense (multiple of 128), as large as a VMEM budget allows
    vmem_budget = 16 * 2**20                      # per-step block-buffer budget (safe on v7x's 64 MiB)
    bytes_per_row = (3 * C + 2 * Cout) * 4        # 2x x tile + gate scratch + 2x out tile
    cap = max(128, min(max_tile, vmem_budget // max(1, bytes_per_row)))
    cap = min(cap, max(HW, 128))
    cap = (cap // 128) * 128
    tile = cap
    for t in range(cap, 127, -128):               # prefer a tile that divides HW (no padding)
        if HW % t == 0:
            tile = t
            break
    num_tiles = -(-HW // tile)
    HW_pad = num_tiles * tile

    x_flat = x_nchw.reshape(B, C, HW)             # free reshape: no HBM transpose
    if HW_pad != HW:
        # TODO(synk): ragged spatial sizes are handled by zero-padding; a masked tail
        # block would avoid the extra HBM traffic.
        x_flat = jnp.pad(x_flat, ((0, 0), (0, 0), (0, HW_pad - HW)))

    f32 = jnp.float32
    # Pack the tiny encoder / conv parameters into two channel-major blocks.
    gate_params = jnp.concatenate(
        [w0.T.astype(f32),                        # (C, 2)
         b0.reshape(C, 1).astype(f32),            # (C, 1)
         w1.T.astype(f32),                        # (C, C)
         b1.reshape(C, 1).astype(f32)], axis=1)   # -> (C, C + 4)
    conv_params = jnp.concatenate(
        [conv_w.T.astype(f32),                    # (Cout, C)
         conv_b.reshape(Cout, 1).astype(f32)], axis=1)  # -> (Cout, C + 1)

    needed = (2 * C + 2 * Cout + C) * tile * 4 + 8 * (gate_params.size + conv_params.size)
    vmem_limit = int(min(32 * 2**20, max(4 * 2**20, 2 * needed)))

    kernel = functools.partial(coordgate_kernel, H=H, W=W, C=C, Cout=Cout, tile=tile)

    out_flat = pl.pallas_call(
        kernel,
        out_shape=jax.ShapeDtypeStruct((B, Cout, HW_pad), jnp.float32),
        grid_spec=pltpu.PrefetchScalarGridSpec(
            num_scalar_prefetch=0,
            grid=(num_tiles, B),                  # batch innermost -> gate cache reuse
            in_specs=[
                pl.BlockSpec((1, C, tile), lambda s, b: (b, 0, s)),     # x
                pl.BlockSpec((C, C + 4), lambda s, b: (0, 0)),          # encoder params
                pl.BlockSpec((Cout, C + 1), lambda s, b: (0, 0)),       # conv params
            ],
            out_specs=pl.BlockSpec((1, Cout, tile), lambda s, b: (b, 0, s)),
            scratch_shapes=[pltpu.VMEM((C, tile), jnp.float32)],        # cached gate
        ),
        compiler_params=pltpu.CompilerParams(
            dimension_semantics=("parallel", "arbitrary"),
            vmem_limit_bytes=vmem_limit),
    )(x_flat, gate_params, conv_params)

    if HW_pad != HW:
        out_flat = out_flat[:, :, :HW]
    return out_flat.reshape(B, Cout, H, W)


def reference_forward(x_nchw, pos, w0, b0, w1, b1, conv_w, conv_b):
    B, C, H, W = x_nchw.shape
    h = pos @ w0 + b0
    h = h @ w1 + b1
    gate = jax.nn.relu(h)                                    # (HW, C)
    gate = gate.reshape(1, H, W, C).transpose(0, 3, 1, 2)    # (1, C, H, W)
    xg = x_nchw * gate
    y = jnp.einsum('bchw,co->bohw', xg, conv_w) + conv_b[None, :, None, None]
    return y


if __name__ == "__main__":
    # Small shapes consistent with the module: enc_channels == x channels.
    B, Cenc, Cout, H, W = 2, 4, 4, 16, 16

    key = jax.random.PRNGKey(0)
    k_x, k_w0, k_b0, k_w1, k_b1, k_cw, k_cb = jax.random.split(key, 7)

    x = jax.random.normal(k_x, (B, Cenc, H, W), dtype=jnp.float32)

    # Deterministic parameter init (stored as (in, out), i.e. transposed vs torch Linear).
    w0 = jax.random.normal(k_w0, (2, Cenc), dtype=jnp.float32) * 0.5
    b0 = jax.random.normal(k_b0, (Cenc,), dtype=jnp.float32) * 0.1
    w1 = jax.random.normal(k_w1, (Cenc, Cenc), dtype=jnp.float32) * 0.5
    b1 = jax.random.normal(k_b1, (Cenc,), dtype=jnp.float32) * 0.1
    conv_w = jax.random.normal(k_cw, (Cenc, Cout), dtype=jnp.float32) * 0.5
    conv_b = jax.random.normal(k_cb, (Cout,), dtype=jnp.float32) * 0.1

    out = coordgate_pos_forward(x, w0, b0, w1, b1, conv_w, conv_b)
    out = jax.block_until_ready(out)

    # Position buffer for the pure-JAX reference (matches the PyTorch registered buffer).
    xc = jnp.linspace(-1.0, 1.0, H)
    yc = jnp.linspace(-1.0, 1.0, W)
    gx, gy = jnp.meshgrid(xc, yc, indexing='ij')
    pos = jnp.stack([gx, gy], axis=-1).reshape(-1, 2).astype(jnp.float32)

    ref = reference_forward(x, pos, w0, b0, w1, b1, conv_w, conv_b)
    assert out.shape == (B, Cout, H, W)
    assert jnp.allclose(out, ref, atol=1e-4, rtol=1e-4), "mismatch vs reference"

    print("KERNEL_OK")
</pallas_src>

<mosaic_0001>
module attributes {stable_mosaic.version = 11 : i64} {
  func.func @coordgate_kernel(%arg0: i32, %arg1: i32, %arg2: memref<1x4x256xf32, #tpu.memory_space<vmem>>, %arg3: memref<4x8xf32, #tpu.memory_space<vmem>>, %arg4: memref<4x5xf32, #tpu.memory_space<vmem>>, %arg5: memref<1x4x256xf32, #tpu.memory_space<vmem>>, %arg6: memref<4x256xf32, #tpu.memory_space<vmem>>) attributes {dimension_semantics = [#tpu.dimension_semantics<parallel>, #tpu.dimension_semantics<arbitrary>], iteration_bounds = array<i64: 1, 2>, scalar_prefetch = 0 : i64, scratch_operands = 1 : i64, tpu.core_type = #tpu.core_type<tc>, window_params = [{transform_indices = @transform_0, window_bounds = array<i64: 1, 4, 256>}, {pipeline_mode = #tpu.pipeline_mode<synchronous>, transform_indices = @transform_1, window_bounds = array<i64: 4, 8>}, {pipeline_mode = #tpu.pipeline_mode<synchronous>, transform_indices = @transform_2, window_bounds = array<i64: 4, 5>}, {transform_indices = @transform_3, window_bounds = array<i64: 1, 4, 256>}]} {
    %c0_i32 = arith.constant 0 : i32
    %0 = arith.cmpi eq, %arg1, %c0_i32 : i32
    %1 = arith.extui %0 : i1 to i32
    %c0_i32_0 = arith.constant 0 : i32
    %2 = arith.cmpi ne, %1, %c0_i32_0 : i32
    scf.if %2 {
      %38 = tpu.iota {dimensions = array<i32: 1>} : vector<1x256xi32>
      %39 = arith.sitofp %38 : vector<1x256xi32> to vector<1x256xf32>
      %c256_i32 = arith.constant 256 : i32
      %40 = arith.muli %arg0, %c256_i32 : i32
      %41 = arith.sitofp %40 : i32 to f32
      %42 = vector.broadcast %41 : f32 to vector<1x256xf32>
      %43 = arith.addf %39, %42 : vector<1x256xf32>
      %cst = arith.constant 6.250000e-02 : f32
      %44 = vector.broadcast %cst : f32 to vector<1x256xf32>
      %45 = arith.mulf %43, %44 : vector<1x256xf32>
      %46 = math.floor %45 : vector<1x256xf32>
      %cst_10 = arith.constant 1.600000e+01 : f32
      %47 = vector.broadcast %cst_10 : f32 to vector<1x256xf32>
      %48 = arith.mulf %46, %47 : vector<1x256xf32>
      %49 = arith.subf %43, %48 : vector<1x256xf32>
      %cst_11 = arith.constant 0.000000e+00 : f32
      %50 = vector.broadcast %cst_11 : f32 to vector<1x256xf32>
      %51 = arith.cmpf olt, %49, %50 : vector<1x256xf32>
      %cst_12 = arith.constant 1.000000e+00 : f32
      %52 = vector.broadcast %cst_12 : f32 to vector<1x256xf32>
      %53 = arith.subf %46, %52 : vector<1x256xf32>
      %54 = arith.select %51, %53, %46 : vector<1x256xi1>, vector<1x256xf32>
      %cst_13 = arith.constant 0.000000e+00 : f32
      %55 = vector.broadcast %cst_13 : f32 to vector<1x256xf32>
      %56 = arith.cmpf olt, %49, %55 : vector<1x256xf32>
      %cst_14 = arith.constant 1.600000e+01 : f32
      %57 = vector.broadcast %cst_14 : f32 to vector<1x256xf32>
      %58 = arith.addf %49, %57 : vector<1x256xf32>
      %59 = arith.select %56, %58, %49 : vector<1x256xi1>, vector<1x256xf32>
      %cst_15 = arith.constant 1.600000e+01 : f32
      %60 = vector.broadcast %cst_15 : f32 to vector<1x256xf32>
      %61 = arith.cmpf oge, %59, %60 : vector<1x256xf32>
      %cst_16 = arith.constant 1.000000e+00 : f32
      %62 = vector.broadcast %cst_16 : f32 to vector<1x256xf32>
      %63 = arith.addf %54, %62 : vector<1x256xf32>
      %64 = arith.select %61, %63, %54 : vector<1x256xi1>, vector<1x256xf32>
      %cst_17 = arith.constant 1.600000e+01 : f32
      %65 = vector.broadcast %cst_17 : f32 to vector<1x256xf32>
      %66 = arith.cmpf oge, %59, %65 : vector<1x256xf32>
      %cst_18 = arith.constant 1.600000e+01 : f32
      %67 = vector.broadcast %cst_18 : f32 to vector<1x256xf32>
      %68 = arith.subf %59, %67 : vector<1x256xf32>
      %69 = arith.select %66, %68, %59 : vector<1x256xi1>, vector<1x256xf32>
      %cst_19 = arith.constant 0.13333334 : f32
      %70 = vector.broadcast %cst_19 : f32 to vector<1x256xf32>
      %71 = arith.mulf %70, %64 : vector<1x256xf32>
      %cst_20 = arith.constant 1.000000e+00 : f32
      %72 = vector.broadcast %cst_20 : f32 to vector<1x256xf32>
      %73 = arith.subf %71, %72 : vector<1x256xf32>
      %cst_21 = arith.constant 0.13333334 : f32
      %74 = vector.broadcast %cst_21 : f32 to vector<1x256xf32>
      %75 = arith.mulf %74, %69 : vector<1x256xf32>
      %cst_22 = arith.constant 1.000000e+00 : f32
      %76 = vector.broadcast %cst_22 : f32 to vector<1x256xf32>
      %77 = arith.subf %75, %76 : vector<1x256xf32>
      %c0_23 = arith.constant 0 : index
      %c0_24 = arith.constant 0 : index
      %78 = vector.load %arg3[%c0_23, %c0_24] : memref<4x8xf32, #tpu.memory_space<vmem>>, vector<4x8xf32>
      %79 = vector.extract_strided_slice %78 {offsets = [0, 0], sizes = [4, 2], strides = [1, 1]} : vector<4x8xf32> to vector<4x2xf32>
      %80 = vector.extract_strided_slice %78 {offsets = [0, 2], sizes = [4, 1], strides = [1, 1]} : vector<4x8xf32> to vector<4x1xf32>
      %81 = vector.extract_strided_slice %78 {offsets = [0, 3], sizes = [4, 4], strides = [1, 1]} : vector<4x8xf32> to vector<4x4xf32>
      %82 = vector.extract_strided_slice %78 {offsets = [0, 7], sizes = [4, 1], strides = [1, 1]} : vector<4x8xf32> to vector<4x1xf32>
      %83 = vector.extract_strided_slice %79 {offsets = [0, 0], sizes = [4, 1], strides = [1, 1]} : vector<4x2xf32> to vector<4x1xf32>
      %84 = vector.broadcast %83 : vector<4x1xf32> to vector<4x256xf32>
      %85 = vector.broadcast %73 : vector<1x256xf32> to vector<4x256xf32>
      %86 = arith.mulf %84, %85 : vector<4x256xf32>
      %87 = vector.extract_strided_slice %79 {offsets = [0, 1], sizes = [4, 1], strides = [1, 1]} : vector<4x2xf32> to vector<4x1xf32>
      %88 = vector.broadcast %87 : vector<4x1xf32> to vector<4x256xf32>
      %89 = vector.broadcast %77 : vector<1x256xf32> to vector<4x256xf32>
      %90 = arith.mulf %88, %89 : vector<4x256xf32>
      %91 = arith.addf %86, %90 : vector<4x256xf32>
      %92 = vector.broadcast %80 : vector<4x1xf32> to vector<4x256xf32>
      %93 = arith.addf %91, %92 : vector<4x256xf32>
      %94 = vector.extract_strided_slice %81 {offsets = [0, 0], sizes = [4, 1], strides = [1, 1]} : vector<4x4xf32> to vector<4x1xf32>
      %95 = vector.extract_strided_slice %93 {offsets = [0, 0], sizes = [1, 256], strides = [1, 1]} : vector<4x256xf32> to vector<1x256xf32>
      %96 = vector.broadcast %94 : vector<4x1xf32> to vector<4x256xf32>
      %97 = vector.broadcast %95 : vector<1x256xf32> to vector<4x256xf32>
      %98 = arith.mulf %96, %97 : vector<4x256xf32>
      %99 = vector.extract_strided_slice %81 {offsets = [0, 1], sizes = [4, 1], strides = [1, 1]} : vector<4x4xf32> to vector<4x1xf32>
      %100 = vector.extract_strided_slice %93 {offsets = [1, 0], sizes = [1, 256], strides = [1, 1]} : vector<4x256xf32> to vector<1x256xf32>
      %101 = vector.broadcast %99 : vector<4x1xf32> to vector<4x256xf32>
      %102 = vector.broadcast %100 : vector<1x256xf32> to vector<4x256xf32>
      %103 = arith.mulf %101, %102 : vector<4x256xf32>
      %104 = arith.addf %98, %103 : vector<4x256xf32>
      %105 = vector.extract_strided_slice %81 {offsets = [0, 2], sizes = [4, 1], strides = [1, 1]} : vector<4x4xf32> to vector<4x1xf32>
      %106 = vector.extract_strided_slice %93 {offsets = [2, 0], sizes = [1, 256], strides = [1, 1]} : vector<4x256xf32> to vector<1x256xf32>
      %107 = vector.broadcast %105 : vector<4x1xf32> to vector<4x256xf32>
      %108 = vector.broadcast %106 : vector<1x256xf32> to vector<4x256xf32>
      %109 = arith.mulf %107, %108 : vector<4x256xf32>
      %110 = arith.addf %104, %109 : vector<4x256xf32>
      %111 = vector.extract_strided_slice %81 {offsets = [0, 3], sizes = [4, 1], strides = [1, 1]} : vector<4x4xf32> to vector<4x1xf32>
      %112 = vector.extract_strided_slice %93 {offsets = [3, 0], sizes = [1, 256], strides = [1, 1]} : vector<4x256xf32> to vector<1x256xf32>
      %113 = vector.broadcast %111 : vector<4x1xf32> to vector<4x256xf32>
      %114 = vector.broadcast %112 : vector<1x256xf32> to vector<4x256xf32>
      %115 = arith.mulf %113, %114 : vector<4x256xf32>
      %116 = arith.addf %110, %115 : vector<4x256xf32>
      %117 = vector.broadcast %82 : vector<4x1xf32> to vector<4x256xf32>
      %118 = arith.addf %116, %117 : vector<4x256xf32>
      %cst_25 = arith.constant 0.000000e+00 : f32
      %119 = vector.broadcast %cst_25 : f32 to vector<4x256xf32>
      %120 = arith.maximumf %118, %119 : vector<4x256xf32>
      %c0_26 = arith.constant 0 : index
      %c0_27 = arith.constant 0 : index
      %121 = vector.load %arg6[%c0_26, %c0_27] : memref<4x256xf32, #tpu.memory_space<vmem>>, vector<4x256xf32>
      tpu.vector_store %arg6[%c0_26, %c0_27], %120 {strides = array<i32>} : memref<4x256xf32, #tpu.memory_space<vmem>>, vector<4x256xf32>,
    } else {
    }
    %c0 = arith.constant 0 : index
    %c0_1 = arith.constant 0 : index
    %3 = vector.load %arg4[%c0, %c0_1] : memref<4x5xf32, #tpu.memory_space<vmem>>, vector<4x5xf32>
    %4 = vector.extract_strided_slice %3 {offsets = [0, 0], sizes = [4, 4], strides = [1, 1]} : vector<4x5xf32> to vector<4x4xf32>
    %5 = vector.extract_strided_slice %3 {offsets = [0, 4], sizes = [4, 1], strides = [1, 1]} : vector<4x5xf32> to vector<4x1xf32>
    %c0_2 = arith.constant 0 : index
    %c0_3 = arith.constant 0 : index
    %c0_4 = arith.constant 0 : index
    %6 = vector.load %arg2[%c0_2, %c0_3, %c0_4] : memref<1x4x256xf32, #tpu.memory_space<vmem>>, vector<1x4x256xf32>
    %7 = vector.shape_cast %6 : vector<1x4x256xf32> to vector<4x256xf32>
    %c0_5 = arith.constant 0 : index
    %c0_6 = arith.constant 0 : index
    %8 = vector.load %arg6[%c0_5, %c0_6] : memref<4x256xf32, #tpu.memory_space<vmem>>, vector<4x256xf32>
    %9 = arith.mulf %7, %8 : vector<4x256xf32>
    %10 = vector.extract_strided_slice %4 {offsets = [0, 0], sizes = [4, 1], strides = [1, 1]} : vector<4x4xf32> to vector<4x1xf32>
    %11 = vector.extract_strided_slice %9 {offsets = [0, 0], sizes = [1, 256], strides = [1, 1]} : vector<4x256xf32> to vector<1x256xf32>
    %12 = vector.broadcast %10 : vector<4x1xf32> to vector<4x256xf32>
    %13 = vector.broadcast %11 : vector<1x256xf32> to vector<4x256xf32>
    %14 = arith.mulf %12, %13 : vector<4x256xf32>
    %15 = vector.extract_strided_slice %4 {offsets = [0, 1], sizes = [4, 1], strides = [1, 1]} : vector<4x4xf32> to vector<4x1xf32>
    %16 = vector.extract_strided_slice %9 {offsets = [1, 0], sizes = [1, 256], strides = [1, 1]} : vector<4x256xf32> to vector<1x256xf32>
    %17 = vector.broadcast %15 : vector<4x1xf32> to vector<4x256xf32>
    %18 = vector.broadcast %16 : vector<1x256xf32> to vector<4x256xf32>
    %19 = arith.mulf %17, %18 : vector<4x256xf32>
    %20 = arith.addf %14, %19 : vector<4x256xf32>
    %21 = vector.extract_strided_slice %4 {offsets = [0, 2], sizes = [4, 1], strides = [1, 1]} : vector<4x4xf32> to vector<4x1xf32>
    %22 = vector.extract_strided_slice %9 {offsets = [2, 0], sizes = [1, 256], strides = [1, 1]} : vector<4x256xf32> to vector<1x256xf32>
    %23 = vector.broadcast %21 : vector<4x1xf32> to vector<4x256xf32>
    %24 = vector.broadcast %22 : vector<1x256xf32> to vector<4x256xf32>
    %25 = arith.mulf %23, %24 : vector<4x256xf32>
    %26 = arith.addf %20, %25 : vector<4x256xf32>
    %27 = vector.extract_strided_slice %4 {offsets = [0, 3], sizes = [4, 1], strides = [1, 1]} : vector<4x4xf32> to vector<4x1xf32>
    %28 = vector.extract_strided_slice %9 {offsets = [3, 0], sizes = [1, 256], strides = [1, 1]} : vector<4x256xf32> to vector<1x256xf32>
    %29 = vector.broadcast %27 : vector<4x1xf32> to vector<4x256xf32>
    %30 = vector.broadcast %28 : vector<1x256xf32> to vector<4x256xf32>
    %31 = arith.mulf %29, %30 : vector<4x256xf32>
    %32 = arith.addf %26, %31 : vector<4x256xf32>
    %33 = vector.broadcast %5 : vector<4x1xf32> to vector<4x256xf32>
    %34 = arith.addf %32, %33 : vector<4x256xf32>
    %c0_7 = arith.constant 0 : index
    %c0_8 = arith.constant 0 : index
    %c0_9 = arith.constant 0 : index
    %35 = vector.load %arg5[%c0_7, %c0_8, %c0_9] : memref<1x4x256xf32, #tpu.memory_space<vmem>>, vector<1x4x256xf32>
    %36 = vector.shape_cast %35 : vector<1x4x256xf32> to vector<4x256xf32>
    %37 = vector.shape_cast %34 : vector<4x256xf32> to vector<1x4x256xf32>
    tpu.vector_store %arg5[%c0_7, %c0_8, %c0_9], %37 {strides = array<i32>} : memref<1x4x256xf32, #tpu.memory_space<vmem>>, vector<1x4x256xf32>,
    return
  }
  func.func @transform_0(%arg0: i32, %arg1: i32) -> (i32, i32, i32) {
    %c0_i32 = arith.constant 0 : i32
    %c0_i32_0 = arith.constant 0 : i32
    return %arg1, %c0_i32, %arg0 : i32, i32, i32
  }
  func.func @transform_1(%arg0: i32, %arg1: i32) -> (i32, i32) {
    %c0_i32 = arith.constant 0 : i32
    %c0_i32_0 = arith.constant 0 : i32
    %c0_i32_1 = arith.constant 0 : i32
    return %c0_i32, %c0_i32_0 : i32, i32
  }
  func.func @transform_2(%arg0: i32, %arg1: i32) -> (i32, i32) {
    %c0_i32 = arith.constant 0 : i32
    %c0_i32_0 = arith.constant 0 : i32
    %c0_i32_1 = arith.constant 0 : i32
    return %c0_i32, %c0_i32_0 : i32, i32
  }
  func.func @transform_3(%arg0: i32, %arg1: i32) -> (i32, i32, i32) {
    %c0_i32 = arith.constant 0 : i32
    %c0_i32_0 = arith.constant 0 : i32
    return %arg1, %c0_i32, %arg0 : i32, i32, i32
  }
}

</mosaic_0001>

<bundles_post_ra>
// kernel: tpu_custom_call.1
= control target key start
LH: loop header
LB: loop body
LE: loop exit
PB: predicated region body
PF: predicated region fallthrough
CT: control target
= control target key end

     0   :  { %8 = vsyncpa [#allocation4], 0  ;;  %s1144_s0 = inlined_call_operand.hbm [shape: f32[2,4,256], index: 0, kind: input, shape index: {}]   ;;  %s1145_s1 = inlined_call_operand.hbm [shape: f32[4,8], index: 1, kind: input, shape index: {}]   ;;  %s1146_s2 = inlined_call_operand.hbm [shape: f32[4,5], index: 2, kind: input, shape index: {}]   ;;  %s1147_s3 = inlined_call_operand.hbm [shape: f32[2,4,256], index: 3, kind: output, shape index: {}]  }
   0x1   :  { %10 = vsyncpa [#allocation4 + $0x1], 0 }
   0x2   :  { %11 = vsyncpa [#allocation7], 0 }
   0x3   :  { %12 = vsyncpa [#allocation5], 0 }
   0x4   :  { %14 = vsyncpa [#allocation5 + $0x1], 0  ;;  %s962_s12 = smov 0   ;;  %s964_s13 = smov 0  }
   0x5   :  { %s966_s14 = smov 0   ;;  %s968_s15 = smov 0  }
   0x6   :  { %s970_s16 = smov 0   ;;  %s972_s17 = smov 0  }
   0x7 LB: > { %s618_s18 = sadd.s32 4294967295, %s923_s17   ;;  %s619_s19 = sadd.s32 4294967294, %s923_s17   ;;  %s923_s17 = sphi %s972_s17, %s20_s17   ;;  %s919_s16 = sphi %s970_s16, %s1170_s16   ;;  %s915_s15 = sphi %s968_s15, %s1169_s15   ;;  %s911_s14 = sphi %s966_s14, %s1168_s14   ;;  %s907_s13 = sphi %s964_s13, %s1167_s13   ;;  %s903_s12 = sphi %s962_s12, %s1166_s12  }
   0x8   : > { %p54_p0 = scmp.ne.s32.totalorder %s907_s13, %s903_s12  ;;  %p996_p1 = scmp.eq.s32.totalorder %s618_s18, 0 }
   0x9   : > { %p1000_p2 = scmp.eq.s32.totalorder %s618_s18, 1  ;;  %p128_p3 = scmp.eq.s32.totalorder %s619_s19, 1 }
   0xa   : > { %s1152_s20 = scalar_select %p996_p1, 1, 0 }
   0xb   : > { %s1153_s21 = scalar_select %p1000_p2, 1, 0 }
   0xc   : > { %p1006_p4 = por %p996_p1, %p54_p0  ;;  %p620_p5 = scmp.ge.s32.totalorder %s923_s17, 1 }
   0xd   : > { %p1011_p6 = por %p128_p3, %p54_p0  ;;  %p135_p7 = scmp.lt.s32.totalorder %s923_s17, 3 }
   0xe   : > { %s1154_s22 = scalar_select %p1006_p4, 1, 0 }
   0xf   : > { %s1155_s23 = scalar_select %p1011_p6, 1, 0 }
  0x10   : > { %p1016_p8 = pnand %p620_p5, %p135_p7  ;;  %s925_s25 = smov [#allocation6]  }
  0x11   : > { %s148_s26 = sshll.u32 %s925_s25, 4  ;;  %s926_s27 = smov [#allocation8]   ;;  %s149_s26 = int_to_ptr.vmem [resolvable:$true] %s148_s26 }
  0x12   : > { %s1156_s24 = scalar_select %p1016_p8, 1, 0 }
  0x13   : > { %p660_p10 = pneg %p1016_p8  ;;  %s159_s28 = sshll.u32 %s926_s27, 4  ;;  %s160_s28 = int_to_ptr.vmem [resolvable:$true] %s159_s28 }
  0x14   : > { %s770_s30 = scalar_lea.vmem %s149_s26, 64  ;;  %p778_p5 = scmp.lt.s32.totalorder %s149_s26, %s149_s26 }
  0x15   : > { %p1025_p11 = pnand %p660_p10, %p996_p1  ;;  %p771_p13 = scmp.ne.s32.totalorder %s149_s26, %s770_s30 }
  0x16   : > { %p779_p7 = scmp.lt.s32.totalorder %s770_s30, %s770_s30 }
  0x17   : > { %p761_p12 = pneg %p1025_p11 }
  0x18   : > { %p780_p9 = por %p779_p7, %p778_p5 }
  0x19   : > { %p773_p0 = pnand %p771_p13, %p761_p12 }
  0x1b   : > { %p774_p3 = pneg %p773_p0 }
  0x1d   : > { %p781_p6 = pnand %p780_p9, %p774_p3 }
  0x1f   : > { %784 = shalt.err (!%p781_p6)
}
  0x20   : > { %663 = dma.hbm_to_vmem [thread:$0]  (!%p1025_p11), %s1145_s1, 64, %s149_s26, [#allocation7]  }
  0x21   : > { %s796_s6 = scalar_lea.vmem %s160_s28, 64  ;;  %p804_p13 = scmp.lt.s32.totalorder %s160_s28, %s160_s28 }
  0x22   : > { %p797_p10 = scmp.ne.s32.totalorder %s160_s28, %s796_s6  ;;  %p805_p0 = scmp.lt.s32.totalorder %s796_s6, %s796_s6 }
  0x24   : > { %p799_p1 = pnand %p797_p10, %p761_p12  ;;  %p806_p8 = por %p805_p0, %p804_p13 }
  0x26   : > { %p800_p4 = pneg %p799_p1 }
  0x28   : > { %p807_p2 = pnand %p806_p8, %p800_p4 }
  0x2a   : > { %810 = shalt.err (!%p807_p2)
}
  0x2b   : > { %666 = dma.hbm_to_vmem [thread:$0]  (!%p1025_p11), %s1146_s2, 64, %s160_s28, [#allocation7]  }
  0x2c   : > { %s29_s9 = sadd.s32 1, %s919_s16  ;;  %s41_s10 = sadd.s32 1, %s911_s14 }
  0x2d   : > { %p30_p1 = scmp.ge.s32.totalorder %s29_s9, 2  ;;  %p48_p2 = scmp.ne.s32.totalorder %s911_s14, %s907_s13 }
  0x2e   : > { %p49_p4 = scmp.eq.s32.totalorder %s923_s17, 0  ;;  %p677_p6 = scmp.lt.s32.totalorder %s923_s17, 2 }
  0x2f   : > { %s1172_s9 = smov (%p30_p1, %s29_s9), 0  ;;  %p1158_p9 = scmp.ne.s32.totalorder %s1153_s21, 0 }
  0x30   : > { %p50_p8 = por %p49_p4, %p48_p2  ;;  %s36_s18 = ssub.s32 %s919_s16, %s1172_s9 }
  0x31   : > { %p1057_p12 = por %p1158_p9, %p48_p2  ;;  %s170_s19 = sand.u32 1, %s911_s14  }
  0x32   : > { %p39_p3 = scmp.eq.s32.totalorder %s36_s18, 0  ;;  %s624_s25 = sshll.u32 %s170_s19, 3 }
  0x33   : > { %s646_s26 = sshll.u32 %s919_s16, 7  ;;  %s174_s4 = scalar_lea.vmem [#allocation3], %s624_s25 }
  0x34   : > { %s1066_s27 = scalar_select %p39_p3, %s911_s14, %s41_s10  }
  0x35   : > { %s182_s30 = scalar_lea.hbm %s1144_s0, %s646_s26  ;;  %s184_s5 = sshll.u32 %s174_s4, 4  ;;  %s185_s5 = int_to_ptr.vmem [resolvable:$true] %s184_s5 }
  0x36   : > { %p1073_p11 = pnand %p677_p6, %p50_p8  ;;  %s171_s6 = scalar_lea.sflag [#allocation4], %s170_s19 }
  0x37   : > { %s824_s7 = scalar_lea.vmem %s185_s5, 128  ;;  %s927_s8 = smov [#allocation3]  }
  0x38   : > { %p813_p5 = pneg %p1073_p11  ;;  %p825_p7 = scmp.ne.s32.totalorder %s185_s5, %s824_s7 }
  0x39   : > { %s829_s10 = sshll.u32 %s927_s8, 4  ;;  %s830_s10 = int_to_ptr.vmem [resolvable:$false] %s829_s10 }
  0x3a   : > { %p827_p10 = pnand %p825_p7, %p813_p5  ;;  %s831_s18 = scalar_lea.vmem %s830_s10, 256 }
  0x3b   : > { %p832_p0 = scmp.lt.s32.totalorder %s185_s5, %s830_s10  ;;  %p833_p1 = scmp.lt.s32.totalorder %s831_s18, %s824_s7 }
  0x3c   : > { %p828_p13 = pneg %p827_p10 }
  0x3d   : > { %p834_p2 = por %p833_p1, %p832_p0 }
  0x3f   : > { %p835_p4 = pnand %p834_p2, %p828_p13 }
  0x41   : > { %838 = shalt.err (!%p835_p4)
}
  0x42   : > { %670 = dma.hbm_to_vmem [thread:$0]  (!%p1073_p11), %s182_s30, 128, %s185_s5, %s171_s6  }
  0x43   : > { %p1161_p6 = scmp.ne.s32.totalorder %s1156_s24, 0 }
  0x44   : > { %s1084_s19 = sand.u32 (!%p1161_p6), 1, %s907_s13   ;;  %p1162_p8 = scmp.ne.s32.totalorder (!%p1161_p6), %s1154_s22, 0 }
  0x45   : > { %193 = sbr.rel (%p1161_p6) target bundleno = 395 (0x18b), region = 32  ;;  %s628_s25 = sshll.u32 (!%p1161_p6), %s1084_s19, 3 }
  0x46   : > { %s196_s26 = scalar_lea.sflag (!%p1161_p6), [#allocation4], %s1084_s19  ;;  %s1088_s28 = scalar_lea.vmem (!%p1161_p6), [#allocation3], %s628_s25 }
  0x4a   : > { %890 = dma.done.wait (%p1162_p8), %s196_s26, 128  }
  0x4b   : > { %892 = vsyncadd (%p1162_p8), %s196_s26, 4294967168  ;;  %p1163_p9 = scmp.ne.s32.totalorder %s1152_s20, 0 }
  0x4d   : > { %894 = dma.done.wait (%p1163_p9), [#allocation7], 128  }
  0x4e   : > { %896 = vsyncadd (%p1163_p9), [#allocation7], 4294967168  ;;  %s1098_s24 = scalar_lea.vmem [#allocation9], %s628_s25  ;;  %p632_p3 = scmp.ne.s32.totalorder %s915_s15, 0 }
  0x50   : > { %235 = sbr.rel (%p632_p3) target bundleno = 239 (0xef), region = 48 }
  0x55   : > { %v282_v0 = vld [vmem:[#allocation6] sm:$0xf]  ;;  %v928_v1 = vmov 2   ;;  %v929_v2 = vmov 0   ;;  %v930_v3 = vmov 3   ;;  %v931_v4 = vmov 1  }
  0x56   : > { %746 = vset.pattern.permute.xlu1 %v928_v1  ;;  %744 = vset.pattern.permute.xlu0 %v929_v2  ;;  %v932_v5 = vmov 4   ;;  %v933_v6 = vmov 5   ;;  %v934_v7 = vmov 6   ;;  %v935_v8 = vmov 7  }
  0x57   : > { %299 = vperm.xlu1 %746, %v282_v0   ;;  %285 = vperm.xlu0 %744, %v282_v0   ;;  %v236_v9 = vlaneseq }
  0x59   : > { %v237_v10 = vand.u32 127, %v236_v9  ;;  %v309_v48 = vshrl.u32 %v236_v9, 7 }
  0x5b   : > { %747 = vset.pattern.permute.xlu1 %v930_v3  ;;  %745 = vset.pattern.permute.xlu0 %v931_v4  ;;  %v238_v11 = vadd.s32 128, %v237_v10  ;;  %v239_v12 = vcvt.s32.f32 %v237_v10  ;;  %v310_v57 = vsub.s32 0, %v309_v48  ;;  %v324_v58 = vsub.s32 1, %v309_v48 }
  0x5c   : > { %305 = vperm.xlu1 %747, %v282_v0   ;;  %291 = vperm.xlu0 %745, %v282_v0   ;;  %v340_v59 = vsub.s32 2, %v309_v48  ;;  %v356_v63 = vsub.s32 3, %v309_v48 }
  0x5d   : > { %v240_v13 = vcvt.s32.f32 %v238_v11  ;;  %v246_v14 = vmul.f32 0.0625, %v239_v12 }
  0x5f   : > { %v247_v15 = vmul.f32 0.0625, %v240_v13  ;;  %v248_v16 = vfloor.f32 %v246_v14 }
  0x60   : > { %748 = vset.pattern.permute.xlu1 %v932_v5  ;;  %749 = vset.pattern.permute.xlu0 %v933_v6 }
  0x61   : > { %319 = vperm.xlu1 %748, %v282_v0   ;;  %335 = vperm.xlu0 %749, %v282_v0   ;;  %v249_v17 = vfloor.f32 %v247_v15  ;;  %v250_v18 = vmul.f32 16.0, %v248_v16  ;;  %v633_v22 = vadd.f32 -1.0, %v248_v16 }
  0x63   : > { %v251_v19 = vmul.f32 16.0, %v249_v17  ;;  %v252_v20 = vsub.f32 %v239_v12, %v250_v18  ;;  %v634_v23 = vadd.f32 -1.0, %v249_v17 }
  0x65   : > { %750 = vset.pattern.permute.xlu1 %v934_v7  ;;  %752 = vset.pattern.permute.xlu0 %v935_v8  ;;  %v253_v21 = vsub.f32 %v240_v13, %v251_v19  ;;  %vm254_vm0 = vcmp.lt.f32.partialorder %v252_v20, 0.0  ;;  %v260_v24 = vadd.f32 16.0, %v252_v20 }
  0x66   : > { %351 = vperm.xlu1 %750, %v282_v0   ;;  %v258_v26 = vsel %vm254_vm0, %v633_v22, %v248_v16 }
  0x67   : > { %vm255_vm1 = vcmp.lt.f32.partialorder %v253_v21, 0.0  ;;  %v261_v25 = vadd.f32 16.0, %v253_v21  ;;  %v262_v28 = vsel %vm254_vm0, %v260_v24, %v252_v20  ;;  %v266_v30 = vadd.f32 1.0, %v258_v26 }
  0x68   : > { %v259_v27 = vsel %vm255_vm1, %v634_v23, %v249_v17  ;;  %vm264_vm2 = vcmp.ge.f32.partialorder %v262_v28, 16.0  ;;  %v635_v32 = vadd.f32 -16.0, %v262_v28 }
  0x69   : > { %v263_v29 = vsel %vm255_vm1, %v261_v25, %v253_v21  ;;  %v267_v31 = vadd.f32 1.0, %v259_v27  ;;  %v268_v34 = vsel %vm264_vm2, %v266_v30, %v258_v26 }
  0x6a   : > { %751 = vset.pattern.permute.xlu1 %v935_v8  ;;  %v636_v33 = vadd.f32 -16.0, %v263_v29  ;;  %vm265_vm3 = vcmp.ge.f32.partialorder %v263_v29, 16.0  ;;  %v272_v36 = vsel %vm264_vm2, %v635_v32, %v262_v28  ;;  %v274_v38 = vmul.f32 0.13333334, %v268_v34 }
  0x6b   : > { %367 = vperm.xlu1 %751, %v282_v0   ;;  %v269_v35 = vsel %vm265_vm3, %v267_v31, %v259_v27  ;;  %v278_v40 = vmul.f32 0.13333334, %v272_v36 }
  0x6c   : > { %v273_v37 = vsel %vm265_vm3, %v636_v33, %v263_v29  ;;  %v275_v39 = vmul.f32 0.13333334, %v269_v35  ;;  %v637_v44 = vadd.f32 -1.0, %v274_v38 }
  0x6d   : > { %v279_v41 = vmul.f32 0.13333334, %v273_v37  ;;  %v639_v46 = vadd.f32 -1.0, %v278_v40 }
  0x6e   : > { %v638_v45 = vadd.f32 -1.0, %v275_v39 }
  0x6f   : > { %v640_v47 = vadd.f32 -1.0, %v279_v41 }
  0xd2   : > { %v286_v42 = vpop.permute.xlu0 %285  ;;  %v300_v43 = vpop.permute.xlu1 %299 }
  0xd3   : > { %v288_v51 = vmul.f32 %v637_v44, %v286_v42  ;;  %v289_v52 = vmul.f32 %v638_v45, %v286_v42 }
  0xd7   : > { %v292_v49 = vpop.permute.xlu0 %291  ;;  %v306_v50 = vpop.permute.xlu1 %305 }
  0xd8   : > { %v294_v53 = vmul.f32 %v639_v46, %v292_v49  ;;  %v295_v54 = vmul.f32 %v640_v47, %v292_v49 }
  0xda   : > { %v296_v55 = vadd.f32 %v294_v53, %v288_v51  ;;  %v297_v56 = vadd.f32 %v295_v54, %v289_v52 }
  0xdc   : > { %v302_v60 = vadd.f32 %v300_v43, %v296_v55  ;;  %v303_v61 = vadd.f32 %v300_v43, %v297_v56  ;;  %v320_v62 = vpop.permute.xlu1 %319  ;;  %v336_v4 = vpop.permute.xlu0 %335 }
  0xde   : > { %v311_v0 = vrot.slane %v302_v60, %v310_v57  ;;  %v315_v1 = vrot.slane %v303_v61, %v310_v57  ;;  %v325_v2 = vrot.slane %v302_v60, %v324_v58  ;;  %v329_v3 = vrot.slane %v303_v61, %v324_v58 }
  0xdf   : > { %v341_v5 = vrot.slane %v302_v60, %v340_v59  ;;  %v345_v6 = vrot.slane %v303_v61, %v340_v59  ;;  %v357_v12 = vrot.slane %v302_v60, %v356_v63  ;;  %v361_v13 = vrot.slane %v303_v61, %v356_v63 }
  0xe0   : > { %v316_v7 = vmul.f32 %v311_v0, %v306_v50  ;;  %v317_v8 = vmul.f32 %v315_v1, %v306_v50  ;;  %v330_v9 = vmul.f32 %v325_v2, %v320_v62  ;;  %v331_v10 = vmul.f32 %v329_v3, %v320_v62 }
  0xe1   : > { %v352_v11 = vpop.permute.xlu1 %351  ;;  %v346_v16 = vmul.f32 %v341_v5, %v336_v4  ;;  %v347_v17 = vmul.f32 %v345_v6, %v336_v4 }
  0xe2   : > { %v332_v14 = vadd.f32 %v330_v9, %v316_v7  ;;  %v333_v15 = vadd.f32 %v331_v10, %v317_v8  ;;  %v362_v20 = vmul.f32 %v357_v12, %v352_v11  ;;  %v363_v21 = vmul.f32 %v361_v13, %v352_v11 }
  0xe4   : > { %v348_v18 = vadd.f32 %v346_v16, %v332_v14  ;;  %v349_v19 = vadd.f32 %v347_v17, %v333_v15 }
  0xe6   : > { %v368_v22 = vpop.permute.xlu1 %367  ;;  %v364_v23 = vadd.f32 %v362_v20, %v348_v18  ;;  %v365_v24 = vadd.f32 %v363_v21, %v349_v19 }
  0xe8   : > { %v370_v25 = vadd.f32 %v368_v22, %v364_v23  ;;  %v371_v26 = vadd.f32 %v368_v22, %v365_v24 }
  0xea   : > { %v372_v27 = vmax.f32 %v370_v25, 0.0  ;;  %v373_v28 = vmax.f32 %v371_v26, 0.0 }
  0xec   : > { %v376_v29 = vcombine.low %v372_v27, %v373_v28 }
  0xee   : > { %378 = vst [vmem:[#allocation2] sm:$0xff] %v376_v29 }
  0xef PF: > { %v379_v30 = vld [vmem:[#allocation8] sm:$0xf]  ;;  %v936_v31 = vmov 0   ;;  %v937_v32 = vmov 2   ;;  %v938_v33 = vmov 1   ;;  %v939_v34 = vmov 3  }
  0xf0   : > { %753 = vset.pattern.permute.xlu0 %v936_v31  ;;  %755 = vset.pattern.permute.xlu1 %v937_v32  ;;  %v940_v35 = vmov 4   ;;  %v389_v36 = vlaneseq  ;;  %v380_v37 = vld [vmem:[%s1088_s28] sm:$0xff]  ;;  %s647_s20 = sshll.u32 %s915_s15, 7  ;;  %s515_s22 = sshll.u32 %s1098_s24, 4  ;;  %s516_s22 = int_to_ptr.vmem [resolvable:$true] %s515_s22 }
  0xf1   : > { %385 = vperm.xlu0 %753, %v379_v30   ;;  %436 = vperm.xlu1 %755, %v379_v30   ;;  %s513_s4 = scalar_lea.hbm %s1147_s3, %s647_s20  ;;  %s499_s5 = scalar_lea.sflag [#allocation5], %s1084_s19 }
  0xf2   : > { %v390_v39 = vshrl.u32 %v389_v36, 7  ;;  %s839_s21 = scalar_lea.vmem %s516_s22, 128  ;;  %s941_s6 = smov [#allocation9]  }
  0xf3   : > { %p840_p11 = scmp.ne.s32.totalorder %s516_s22, %s839_s21  ;;  %s843_s7 = sshll.u32 %s941_s6, 4  ;;  %s844_s7 = int_to_ptr.vmem [resolvable:$false] %s843_s7 }
  0xf4   : > { %v391_v41 = vsub.s32 0, %v390_v39  ;;  %v395_v42 = vsub.s32 4, %v390_v39  ;;  %v415_v43 = vsub.s32 1, %v390_v39  ;;  %v419_v44 = vsub.s32 5, %v390_v39  ;;  %s845_s15 = scalar_lea.vmem %s844_s7, 256  ;;  %p846_p10 = scmp.lt.s32.totalorder %s516_s22, %s844_s7 }
  0xf5   : > { %754 = vset.pattern.permute.xlu0 %v938_v33  ;;  %756 = vset.pattern.permute.xlu1 %v939_v34  ;;  %v381_v38 = vld [vmem:[#allocation2] sm:$0xff]  ;;  %v441_v45 = vsub.s32 2, %v390_v39  ;;  %v445_v46 = vsub.s32 6, %v390_v39  ;;  %v467_v47 = vsub.s32 3, %v390_v39  ;;  %v471_v48 = vsub.s32 7, %v390_v39  ;;  %p841_p5 = pnand %p840_p11, %p1057_p12  ;;  %p847_p13 = scmp.lt.s32.totalorder %s845_s15, %s839_s21 }
  0xf6   : > { %410 = vperm.xlu0 %754, %v379_v30   ;;  %462 = vperm.xlu1 %756, %v379_v30   ;;  %v382_v40 = vmul.f32 %v381_v38, %v380_v37 }
  0xf7   : > { %p842_p7 = pneg %p841_p5  ;;  %p848_p0 = por %p847_p13, %p846_p10 }
  0xf8   : > { %v392_v49 = vrot.slane %v382_v40, %v391_v41  ;;  %v396_v50 = vrot.slane %v382_v40, %v395_v42  ;;  %v416_v51 = vrot.slane %v382_v40, %v415_v43  ;;  %v420_v52 = vrot.slane %v382_v40, %v419_v44 }
  0xf9   : > { %v442_v53 = vrot.slane %v382_v40, %v441_v45  ;;  %v446_v54 = vrot.slane %v382_v40, %v445_v46  ;;  %v468_v57 = vrot.slane %v382_v40, %v467_v47  ;;  %v472_v58 = vrot.slane %v382_v40, %v471_v48  ;;  %p849_p1 = pnand %p848_p0, %p842_p7 }
  0xfa   : > { %757 = vset.pattern.permute.xlu1 %v940_v35  ;;  %758 = vset.pattern.permute.xlu0 %v940_v35  ;;  %v402_v59 = vrot.slane %v392_v49, %v391_v41  ;;  %v406_v60 = vrot.slane %v396_v50, %v391_v41  ;;  %v426_v61 = vrot.slane %v416_v51, %v415_v43 }
  0xfb   : > { %488 = vperm.xlu1 %757, %v379_v30   ;;  %v430_v62 = vrot.slane %v420_v52, %v415_v43  ;;  %v452_v63 = vrot.slane %v442_v53, %v441_v45  ;;  %v456_v0 = vrot.slane %v446_v54, %v441_v45  ;;  %v478_v1 = vrot.slane %v468_v57, %v467_v47 }
  0xfc   : > { %v482_v2 = vrot.slane %v472_v58, %v467_v47 }
 0x16c   : > { %v386_v55 = vpop.permute.xlu0 %385  ;;  %v437_v56 = vpop.permute.xlu1 %436 }
 0x16d   : > { %v407_v5 = vmul.f32 %v402_v59, %v386_v55  ;;  %v408_v6 = vmul.f32 %v406_v60, %v386_v55  ;;  %v457_v9 = vmul.f32 %v452_v63, %v437_v56  ;;  %v458_v10 = vmul.f32 %v456_v0, %v437_v56 }
 0x171   : > { %v411_v3 = vpop.permute.xlu0 %410  ;;  %v463_v4 = vpop.permute.xlu1 %462 }
 0x172   : > { %v431_v7 = vmul.f32 %v426_v61, %v411_v3  ;;  %v432_v8 = vmul.f32 %v430_v62, %v411_v3  ;;  %v483_v13 = vmul.f32 %v478_v1, %v463_v4  ;;  %v484_v14 = vmul.f32 %v482_v2, %v463_v4 }
 0x174   : > { %v433_v11 = vadd.f32 %v431_v7, %v407_v5  ;;  %v434_v12 = vadd.f32 %v432_v8, %v408_v6 }
 0x176   : > { %v459_v15 = vadd.f32 %v457_v9, %v433_v11  ;;  %v460_v16 = vadd.f32 %v458_v10, %v434_v12  ;;  %v489_v17 = vpop.permute.xlu1 %488 }
 0x178   : > { %v485_v18 = vadd.f32 %v483_v13, %v459_v15  ;;  %v486_v19 = vadd.f32 %v484_v14, %v460_v16 }
 0x17a   : > { %v491_v20 = vadd.f32 %v489_v17, %v485_v18  ;;  %v492_v21 = vadd.f32 %v489_v17, %v486_v19 }
 0x17c   : > { %v495_v22 = vcombine.low %v491_v20, %v492_v21 }
 0x17e   : > { %497 = vst [vmem:[%s1098_s24] sm:$0xff] %v495_v22 }
 0x17f   : > { %852 = shalt.err (!%p849_p1)
}
 0x180   : > { %s853_s8 = scalar_lea.hbm %s513_s4, 128  ;;  %s857_s19 = scalar_lea.hbm %s1147_s3, 256 }
 0x181   : > { %p854_p2 = scmp.ne.s32.totalorder %s513_s4, %s853_s8  ;;  %p858_p8 = scmp.lt.s32.totalorder %s513_s4, %s1147_s3 }
 0x182   : > { %p859_p9 = scmp.lt.s32.totalorder %s857_s19, %s853_s8 }
 0x183   : > { %p855_p4 = pnand %p854_p2, %p1057_p12 }
 0x184   : > { %p860_p3 = por %p859_p9, %p858_p8 }
 0x185   : > { %p856_p6 = pneg %p855_p4 }
 0x187   : > { %p861_p11 = pnand %p860_p3, %p856_p6 }
 0x189   : > { %864 = shalt.err (!%p861_p11)
}
 0x18a   : > { %658 = dma.vmem_to_hbm [thread:$0]  (%p1057_p12), %s516_s22, 128, %s513_s4, %s499_s5  }
 0x18b PF: > { %s527_s28 = sand.u32 1, %s903_s12   ;;  %p1164_p5 = scmp.ne.s32.totalorder %s1155_s23, 0 }
 0x18c   : > { %p1165_p7 = scmp.ge.s32.totalorder %s923_s17, 2  ;;  %s528_s24 = scalar_lea.sflag [#allocation5], %s527_s28 }
 0x18e   : > { %p672_p10 = pnand %p1165_p7, %p1164_p5 }
 0x190   : > { %p673_p13 = pneg %p672_p10 }
 0x192   : > { %898 = dma.done.wait (%p673_p13), %s528_s24, 128  }
 0x193   : > { %900 = vsyncadd (%p673_p13), %s528_s24, 4294967168  ;;  %s20_s17 = sadd.s32 1, %s923_s17   ;;  %s1166_s12 = smov %s907_s13 }
 0x194   : > { %p17_p0 = scmp.ge.s32.totalorder %s20_s17, 4   ;;  %s1167_s13 = smov %s911_s14 }
 0x195   : > { %s1168_s14 = smov %s1066_s27  ;;  %s1169_s15 = smov %s919_s16 }
 0x196   : > { %s1170_s16 = smov %s1172_s9  ;;  %19 = sbr.rel (!%p17_p0) target bundleno = 7 (0x7), region = 89 }
 0x19b   :  { %533 = vsyncpa [#allocation4], 1 }
 0x19c   :  { %535 = vsyncpa [#allocation4 + $0x1], 1 }
 0x19d   :  { %536 = vsyncpa [#allocation7], 1 }
 0x19e   :  { %537 = vsyncpa [#allocation5], 1 }
 0x19f   :  { %539 = vsyncpa [#allocation5 + $0x1], 1 }

</bundles_post_ra>
